<compile_context>
chip_gen: v7x
topology: tpu7x:2x2x1
jax: 0.10.0
libtpu: 0.0.40
codegen_flags: <defaults>
</compile_context>

<pallas_src>
import jax
import jax.numpy as jnp
from jax import lax
from jax.experimental import pallas as pl
from jax.experimental.pallas import tpu as pltpu


def _kinetic_kernel(
    t_ref,                      # SMEM (1,1) f32
    z1_ref, z2_ref,             # VMEM (TB, D)
    e1_ref, e2_ref,             # VMEM (TB, D)
    wf1_ref, wf2_ref,           # VMEM (D, 2D)   [W11|W21], [W12|W22]
    w11t_ref, w22t_ref,         # VMEM (D, D)    W11^T, W22^T (pre-transposed)
    b_ref, tb_ref,              # VMEM (1, 2D)   [b1|b2], [tb1|tb2]
    dz1_ref, dz2_ref,           # out VMEM (TB, D)
    stats_ref,                  # out VMEM (TB, 4)  [sj1, q1, sj2, q2]
):
    t = t_ref[0, 0]
    tb_rows, d = dz1_ref.shape

    # Fold the two bias broadcasts into one (1, 2D) row, added once below.
    bias_row = b_ref[...] + t * tb_ref[...]

    # ---- fused model forward: two MXU passes over the stacked weights ----
    pre = (jnp.dot(z1_ref[...], wf1_ref[...], preferred_element_type=jnp.float32)
           + jnp.dot(z2_ref[...], wf2_ref[...], preferred_element_type=jnp.float32)
           + bias_row)
    dz = jnp.tanh(pre)
    # (for D a multiple of 128 these lane slices are vreg-tile aligned)
    dz1 = dz[:, :d]
    dz2 = dz[:, d:]
    dz1_ref[...] = dz1
    dz2_ref[...] = dz2

    s1 = dz1 * dz1              # reused by tanh' (VJP) and the quadratic cost
    s2 = dz2 * dz2
    u1 = e1_ref[...] * (1.0 - s1)
    u2 = e2_ref[...] * (1.0 - s2)

    # ---- Hutchinson VJP: plain NN dots against the pre-transposed blocks ----
    g1 = jnp.dot(u1, w11t_ref[...], preferred_element_type=jnp.float32)
    g2 = jnp.dot(u2, w22t_ref[...], preferred_element_type=jnp.float32)

    sj1 = jnp.mean(g1 * g1, axis=-1, keepdims=True)
    sj2 = jnp.mean(g2 * g2, axis=-1, keepdims=True)
    q1 = 0.5 * jnp.mean(s1, axis=-1, keepdims=True)
    q2 = 0.5 * jnp.mean(s2, axis=-1, keepdims=True)

    # Pack the four per-sample scalars into one (TB, 4) tile (one store
    # instead of four (TB,1) buffers).
    col = lax.broadcasted_iota(jnp.int32, (tb_rows, 4), 1)
    stats = jnp.where(col == 0, sj1,
             jnp.where(col == 1, q1,
              jnp.where(col == 2, sj2, q2)))
    stats_ref[...] = stats


def kinetic_wrapper_forward(t, z1, z2, e1, e2, params, *,
                            block_b=None, core_parallel=False,
                            vmem_budget_bytes=None):
    """Returns (dz1_dt, dz2_dt, z1_sqjacnorm, z1_quad, z2_sqjacnorm, z2_quad)."""
    w11, w12, w21, w22, b1, b2, tb1, tb2 = params
    B, D = z1.shape
    two_d = 2 * D
    itemsize = 4  # f32

    # --- one-time weight/bias stacking (in a real training loop this would be
    #     prepared once, not per call; activations are NOT concatenated) ---
    wf1 = jnp.concatenate([w11, w21], axis=1)       # (D, 2D)  [W11 | W21]
    wf2 = jnp.concatenate([w12, w22], axis=1)       # (D, 2D)  [W12 | W22]
    w11t = w11.T                                    # (D, D)   pre-transposed for VJP
    w22t = w22.T                                    # (D, D)
    bias = jnp.concatenate([b1, b2], axis=-1)       # (1, 2D)
    tbias = jnp.concatenate([tb1, tb2], axis=-1)    # (1, 2D)
    t_arr = jnp.full((1, 1), t, dtype=jnp.float32)

    # --- VMEM budget: derive from the actual chip (64 MiB/TC on v7x,
    #     128 MiB on v5e/v6e), keep ~15% headroom for compiler temporaries ---
    if vmem_budget_bytes is None:
        try:
            phys = pltpu.get_tpu_info().vmem_capacity_bytes
        except Exception:
            phys = 64 * 1024 * 1024          # conservative: v7x per-TC VMEM
        vmem_budget_bytes = int(phys * 0.85)

    # Resident (single-buffered) weights + bias rows.
    resident = (2 * D * two_d + 2 * D * D + 2 * two_d) * itemsize

    def _act_bytes(bb):
        # 6 activation streams (z1,z2,e1,e2,dz1,dz2) double-buffered + stats.
        return (6 * 2 * bb * D + 2 * bb * 4) * itemsize

    # --- batch tile: largest divisor of B (<= 1024) that fits the budget ---
    if block_b is None:
        block_b = B
        cand = min(B, 1024)
        while cand >= 8:
            if B % cand == 0 and resident + _act_bytes(cand) <= vmem_budget_bytes:
                block_b = cand
                break
            cand //= 2
    assert B % block_b == 0, "batch must be divisible by the batch tile"
    grid = (B // block_b,)

    vmem_limit = int(min(vmem_budget_bytes,
                         max(32 * 1024 * 1024,
                             int((resident + _act_bytes(block_b)) * 1.25))))

    act_in = pl.BlockSpec((block_b, D), lambda i: (i, 0))
    # Constant index_maps -> single-buffer to halve resident weight VMEM.
    wf_spec = pl.BlockSpec((D, two_d), lambda i: (0, 0),
                           pipeline_mode=pl.Buffered(buffer_count=1))
    wsq_spec = pl.BlockSpec((D, D), lambda i: (0, 0),
                            pipeline_mode=pl.Buffered(buffer_count=1))
    row_spec = pl.BlockSpec((1, two_d), lambda i: (0, 0),
                            pipeline_mode=pl.Buffered(buffer_count=1))
    smem_spec = pl.BlockSpec(memory_space=pltpu.MemorySpace.SMEM)

    # On v7x, set core_parallel=True when the batch grid has >= 2 tiles so the
    # two TensorCores split it (plain "parallel" elsewhere / single-TC chips).
    dims = (pltpu.CORE_PARALLEL if core_parallel else "parallel",)

    dz1_o, dz2_o, stats = pl.pallas_call(
        _kinetic_kernel,
        out_shape=(jax.ShapeDtypeStruct((B, D), jnp.float32),    # dz1
                   jax.ShapeDtypeStruct((B, D), jnp.float32),    # dz2
                   jax.ShapeDtypeStruct((B, 4), jnp.float32)),   # scalars
        grid=grid,
        in_specs=[smem_spec,
                  act_in, act_in, act_in, act_in,
                  wf_spec, wf_spec, wsq_spec, wsq_spec,
                  row_spec, row_spec],
        out_specs=(pl.BlockSpec((block_b, D), lambda i: (i, 0)),
                   pl.BlockSpec((block_b, D), lambda i: (i, 0)),
                   pl.BlockSpec((block_b, 4), lambda i: (i, 0))),
        compiler_params=pltpu.CompilerParams(
            dimension_semantics=dims,
            vmem_limit_bytes=vmem_limit,
        ),
    )(t_arr, z1, z2, e1, e2, wf1, wf2, w11t, w22t, bias, tbias)

    return dz1_o, dz2_o, stats[:, 0], stats[:, 1], stats[:, 2], stats[:, 3]


def _reference(t, z1, z2, e1, e2, params):
    """Pure-JAX reference using jax.vjp (mirrors torch.autograd.grad)."""
    w11, w12, w21, w22, b1, b2, tb1, tb2 = params

    def model(t_, a, b):
        p1 = a @ w11 + b @ w12 + b1 + t_ * tb1
        p2 = a @ w21 + b @ w22 + b2 + t_ * tb2
        return jnp.tanh(p1), jnp.tanh(p2)

    dz1, dz2 = model(t, z1, z2)
    _, vjp1 = jax.vjp(lambda a: model(t, a, z2)[0], z1)
    g1 = vjp1(e1)[0]
    _, vjp2 = jax.vjp(lambda b: model(t, z1, b)[1], z2)
    g2 = vjp2(e2)[0]
    sj1 = jnp.mean(g1 ** 2, axis=1)
    sj2 = jnp.mean(g2 ** 2, axis=1)
    q1 = 0.5 * jnp.mean(dz1 ** 2, axis=1)
    q2 = 0.5 * jnp.mean(dz2 ** 2, axis=1)
    return dz1, dz2, sj1, q1, sj2, q2


if __name__ == "__main__":
    B, D = 8, 32
    key = jax.random.PRNGKey(0)
    ks = jax.random.split(key, 12)

    # Deterministic synthetic parameters (model "weights").
    scale = 1.0 / jnp.sqrt(jnp.float32(D))
    w11 = jax.random.normal(ks[0], (D, D), jnp.float32) * scale
    w12 = jax.random.normal(ks[1], (D, D), jnp.float32) * scale
    w21 = jax.random.normal(ks[2], (D, D), jnp.float32) * scale
    w22 = jax.random.normal(ks[3], (D, D), jnp.float32) * scale
    b1 = jax.random.normal(ks[4], (1, D), jnp.float32) * 0.1
    b2 = jax.random.normal(ks[5], (1, D), jnp.float32) * 0.1
    tb1 = jax.random.normal(ks[6], (1, D), jnp.float32) * 0.1
    tb2 = jax.random.normal(ks[7], (1, D), jnp.float32) * 0.1
    params = (w11, w12, w21, w22, b1, b2, tb1, tb2)

    # Inputs: t scalar, state tuple (z1, z2), Hutchinson probes e1, e2.
    t = jnp.float32(0.5)
    z1 = jax.random.normal(ks[8], (B, D), jnp.float32)
    z2 = jax.random.normal(ks[9], (B, D), jnp.float32)
    e1 = jax.random.normal(ks[10], (B, D), jnp.float32)
    e2 = jax.random.normal(ks[11], (B, D), jnp.float32)

    out = kinetic_wrapper_forward(t, z1, z2, e1, e2, params)
    out = jax.block_until_ready(out)

    ref = _reference(t, z1, z2, e1, e2, params)
    for a, b in zip(out, ref):
        assert jnp.allclose(a, b, atol=1e-5, rtol=1e-5), (a, b)

    print("KERNEL_OK")
</pallas_src>

<mosaic_0001>
module attributes {stable_mosaic.version = 11 : i64} {
  func.func @_kinetic_kernel(%arg0: i32, %arg1: memref<1x1xf32, #tpu.memory_space<smem>>, %arg2: memref<8x32xf32, #tpu.memory_space<vmem>>, %arg3: memref<8x32xf32, #tpu.memory_space<vmem>>, %arg4: memref<8x32xf32, #tpu.memory_space<vmem>>, %arg5: memref<8x32xf32, #tpu.memory_space<vmem>>, %arg6: memref<32x64xf32, #tpu.memory_space<vmem>>, %arg7: memref<32x64xf32, #tpu.memory_space<vmem>>, %arg8: memref<32x32xf32, #tpu.memory_space<vmem>>, %arg9: memref<32x32xf32, #tpu.memory_space<vmem>>, %arg10: memref<1x64xf32, #tpu.memory_space<vmem>>, %arg11: memref<1x64xf32, #tpu.memory_space<vmem>>, %arg12: memref<8x32xf32, #tpu.memory_space<vmem>>, %arg13: memref<8x32xf32, #tpu.memory_space<vmem>>, %arg14: memref<8x4xf32, #tpu.memory_space<vmem>>) attributes {dimension_semantics = [#tpu.dimension_semantics<parallel>], iteration_bounds = array<i64: 1>, scalar_prefetch = 0 : i64, scratch_operands = 0 : i64, tpu.core_type = #tpu.core_type<tc>, window_params = [{transform_indices = @transform_0, window_bounds = array<i64: 1, 1>}, {transform_indices = @transform_1, window_bounds = array<i64: 8, 32>}, {transform_indices = @transform_2, window_bounds = array<i64: 8, 32>}, {transform_indices = @transform_3, window_bounds = array<i64: 8, 32>}, {transform_indices = @transform_4, window_bounds = array<i64: 8, 32>}, {pipeline_mode = #tpu.pipeline_mode<synchronous>, transform_indices = @transform_5, window_bounds = array<i64: 32, 64>}, {pipeline_mode = #tpu.pipeline_mode<synchronous>, transform_indices = @transform_6, window_bounds = array<i64: 32, 64>}, {pipeline_mode = #tpu.pipeline_mode<synchronous>, transform_indices = @transform_7, window_bounds = array<i64: 32, 32>}, {pipeline_mode = #tpu.pipeline_mode<synchronous>, transform_indices = @transform_8, window_bounds = array<i64: 32, 32>}, {pipeline_mode = #tpu.pipeline_mode<synchronous>, transform_indices = @transform_9, window_bounds = array<i64: 1, 64>}, {pipeline_mode = #tpu.pipeline_mode<synchronous>, transform_indices = @transform_10, window_bounds = array<i64: 1, 64>}, {transform_indices = @transform_11, window_bounds = array<i64: 8, 32>}, {transform_indices = @transform_12, window_bounds = array<i64: 8, 32>}, {transform_indices = @transform_13, window_bounds = array<i64: 8, 4>}]} {
    %c0 = arith.constant 0 : index
    %c0_0 = arith.constant 0 : index
    %0 = memref.load %arg1[%c0, %c0_0] : memref<1x1xf32, #tpu.memory_space<smem>>
    %c0_1 = arith.constant 0 : index
    %c0_2 = arith.constant 0 : index
    %1 = vector.load %arg10[%c0_1, %c0_2] : memref<1x64xf32, #tpu.memory_space<vmem>>, vector<1x64xf32>
    %c0_3 = arith.constant 0 : index
    %c0_4 = arith.constant 0 : index
    %2 = vector.load %arg11[%c0_3, %c0_4] : memref<1x64xf32, #tpu.memory_space<vmem>>, vector<1x64xf32>
    %3 = vector.broadcast %0 : f32 to vector<1x64xf32>
    %4 = arith.mulf %3, %2 : vector<1x64xf32>
    %5 = arith.addf %1, %4 : vector<1x64xf32>
    %c0_5 = arith.constant 0 : index
    %c0_6 = arith.constant 0 : index
    %6 = vector.load %arg2[%c0_5, %c0_6] : memref<8x32xf32, #tpu.memory_space<vmem>>, vector<8x32xf32>
    %c0_7 = arith.constant 0 : index
    %c0_8 = arith.constant 0 : index
    %7 = vector.load %arg6[%c0_7, %c0_8] : memref<32x64xf32, #tpu.memory_space<vmem>>, vector<32x64xf32>
    %cst = arith.constant dense<0.000000e+00> : vector<8x64xf32>
    %8 = tpu.matmul %6, %7, %cst {dimension_numbers = #tpu.dot_dimension_numbers<[1], [0], [0], [1], [0, 0, 1, 1], [], []>} : vector<8x32xf32>, vector<32x64xf32>, vector<8x64xf32> -> vector<8x64xf32>
    %c0_9 = arith.constant 0 : index
    %c0_10 = arith.constant 0 : index
    %9 = vector.load %arg3[%c0_9, %c0_10] : memref<8x32xf32, #tpu.memory_space<vmem>>, vector<8x32xf32>
    %c0_11 = arith.constant 0 : index
    %c0_12 = arith.constant 0 : index
    %10 = vector.load %arg7[%c0_11, %c0_12] : memref<32x64xf32, #tpu.memory_space<vmem>>, vector<32x64xf32>
    %cst_13 = arith.constant dense<0.000000e+00> : vector<8x64xf32>
    %11 = tpu.matmul %9, %10, %cst_13 {dimension_numbers = #tpu.dot_dimension_numbers<[1], [0], [0], [1], [0, 0, 1, 1], [], []>} : vector<8x32xf32>, vector<32x64xf32>, vector<8x64xf32> -> vector<8x64xf32>
    %12 = arith.addf %8, %11 : vector<8x64xf32>
    %13 = vector.broadcast %5 : vector<1x64xf32> to vector<8x64xf32>
    %14 = arith.addf %12, %13 : vector<8x64xf32>
    %15 = math.tanh %14 : vector<8x64xf32>
    %16 = vector.extract_strided_slice %15 {offsets = [0, 0], sizes = [8, 32], strides = [1, 1]} : vector<8x64xf32> to vector<8x32xf32>
    %17 = vector.extract_strided_slice %15 {offsets = [0, 32], sizes = [8, 32], strides = [1, 1]} : vector<8x64xf32> to vector<8x32xf32>
    %c0_14 = arith.constant 0 : index
    %c0_15 = arith.constant 0 : index
    %18 = vector.load %arg12[%c0_14, %c0_15] : memref<8x32xf32, #tpu.memory_space<vmem>>, vector<8x32xf32>
    tpu.vector_store %arg12[%c0_14, %c0_15], %16 {strides = array<i32>} : memref<8x32xf32, #tpu.memory_space<vmem>>, vector<8x32xf32>,
    %c0_16 = arith.constant 0 : index
    %c0_17 = arith.constant 0 : index
    %19 = vector.load %arg13[%c0_16, %c0_17] : memref<8x32xf32, #tpu.memory_space<vmem>>, vector<8x32xf32>
    tpu.vector_store %arg13[%c0_16, %c0_17], %17 {strides = array<i32>} : memref<8x32xf32, #tpu.memory_space<vmem>>, vector<8x32xf32>,
    %20 = arith.mulf %16, %16 : vector<8x32xf32>
    %21 = arith.mulf %17, %17 : vector<8x32xf32>
    %c0_18 = arith.constant 0 : index
    %c0_19 = arith.constant 0 : index
    %22 = vector.load %arg4[%c0_18, %c0_19] : memref<8x32xf32, #tpu.memory_space<vmem>>, vector<8x32xf32>
    %cst_20 = arith.constant 1.000000e+00 : f32
    %23 = vector.broadcast %cst_20 : f32 to vector<8x32xf32>
    %24 = arith.subf %23, %20 : vector<8x32xf32>
    %25 = arith.mulf %22, %24 : vector<8x32xf32>
    %c0_21 = arith.constant 0 : index
    %c0_22 = arith.constant 0 : index
    %26 = vector.load %arg5[%c0_21, %c0_22] : memref<8x32xf32, #tpu.memory_space<vmem>>, vector<8x32xf32>
    %cst_23 = arith.constant 1.000000e+00 : f32
    %27 = vector.broadcast %cst_23 : f32 to vector<8x32xf32>
    %28 = arith.subf %27, %21 : vector<8x32xf32>
    %29 = arith.mulf %26, %28 : vector<8x32xf32>
    %c0_24 = arith.constant 0 : index
    %c0_25 = arith.constant 0 : index
    %30 = vector.load %arg8[%c0_24, %c0_25] : memref<32x32xf32, #tpu.memory_space<vmem>>, vector<32x32xf32>
    %cst_26 = arith.constant dense<0.000000e+00> : vector<8x32xf32>
    %31 = tpu.matmul %25, %30, %cst_26 {dimension_numbers = #tpu.dot_dimension_numbers<[1], [0], [0], [1], [0, 0, 1, 1], [], []>} : vector<8x32xf32>, vector<32x32xf32>, vector<8x32xf32> -> vector<8x32xf32>
    %c0_27 = arith.constant 0 : index
    %c0_28 = arith.constant 0 : index
    %32 = vector.load %arg9[%c0_27, %c0_28] : memref<32x32xf32, #tpu.memory_space<vmem>>, vector<32x32xf32>
    %cst_29 = arith.constant dense<0.000000e+00> : vector<8x32xf32>
    %33 = tpu.matmul %29, %32, %cst_29 {dimension_numbers = #tpu.dot_dimension_numbers<[1], [0], [0], [1], [0, 0, 1, 1], [], []>} : vector<8x32xf32>, vector<32x32xf32>, vector<8x32xf32> -> vector<8x32xf32>
    %34 = arith.mulf %31, %31 : vector<8x32xf32>
    %cst_30 = arith.constant dense<0.000000e+00> : vector<8xf32>
    %35 = vector.multi_reduction <add>, %34, %cst_30 [1] : vector<8x32xf32> to vector<8xf32>
    %36 = vector.shape_cast %35 : vector<8xf32> to vector<8x1xf32>
    %cst_31 = arith.constant 3.200000e+01 : f32
    %37 = vector.broadcast %cst_31 : f32 to vector<8x1xf32>
    %38 = arith.divf %36, %37 : vector<8x1xf32>
    %39 = arith.mulf %33, %33 : vector<8x32xf32>
    %cst_32 = arith.constant dense<0.000000e+00> : vector<8xf32>
    %40 = vector.multi_reduction <add>, %39, %cst_32 [1] : vector<8x32xf32> to vector<8xf32>
    %41 = vector.shape_cast %40 : vector<8xf32> to vector<8x1xf32>
    %cst_33 = arith.constant 3.200000e+01 : f32
    %42 = vector.broadcast %cst_33 : f32 to vector<8x1xf32>
    %43 = arith.divf %41, %42 : vector<8x1xf32>
    %cst_34 = arith.constant dense<0.000000e+00> : vector<8xf32>
    %44 = vector.multi_reduction <add>, %20, %cst_34 [1] : vector<8x32xf32> to vector<8xf32>
    %45 = vector.shape_cast %44 : vector<8xf32> to vector<8x1xf32>
    %cst_35 = arith.constant 3.200000e+01 : f32
    %46 = vector.broadcast %cst_35 : f32 to vector<8x1xf32>
    %47 = arith.divf %45, %46 : vector<8x1xf32>
    %cst_36 = arith.constant 5.000000e-01 : f32
    %48 = vector.broadcast %cst_36 : f32 to vector<8x1xf32>
    %49 = arith.mulf %48, %47 : vector<8x1xf32>
    %cst_37 = arith.constant dense<0.000000e+00> : vector<8xf32>
    %50 = vector.multi_reduction <add>, %21, %cst_37 [1] : vector<8x32xf32> to vector<8xf32>
    %51 = vector.shape_cast %50 : vector<8xf32> to vector<8x1xf32>
    %cst_38 = arith.constant 3.200000e+01 : f32
    %52 = vector.broadcast %cst_38 : f32 to vector<8x1xf32>
    %53 = arith.divf %51, %52 : vector<8x1xf32>
    %cst_39 = arith.constant 5.000000e-01 : f32
    %54 = vector.broadcast %cst_39 : f32 to vector<8x1xf32>
    %55 = arith.mulf %54, %53 : vector<8x1xf32>
    %56 = tpu.iota {dimensions = array<i32: 1>} : vector<8x4xi32>
    %c0_i32 = arith.constant 0 : i32
    %57 = vector.broadcast %c0_i32 : i32 to vector<8x4xi32>
    %58 = arith.cmpi eq, %56, %57 : vector<8x4xi32>
    %c1_i32 = arith.constant 1 : i32
    %59 = vector.broadcast %c1_i32 : i32 to vector<8x4xi32>
    %60 = arith.cmpi eq, %56, %59 : vector<8x4xi32>
    %c2_i32 = arith.constant 2 : i32
    %61 = vector.broadcast %c2_i32 : i32 to vector<8x4xi32>
    %62 = arith.cmpi eq, %56, %61 : vector<8x4xi32>
    %63 = vector.shape_cast %43 : vector<8x1xf32> to vector<8x1xf32>
    %64 = vector.broadcast %63 : vector<8x1xf32> to vector<8x4xf32>
    %65 = vector.shape_cast %55 : vector<8x1xf32> to vector<8x1xf32>
    %66 = vector.broadcast %65 : vector<8x1xf32> to vector<8x4xf32>
    %67 = arith.select %62, %64, %66 : vector<8x4xi1>, vector<8x4xf32>
    %68 = vector.shape_cast %49 : vector<8x1xf32> to vector<8x1xf32>
    %69 = vector.broadcast %68 : vector<8x1xf32> to vector<8x4xf32>
    %70 = arith.select %60, %69, %67 : vector<8x4xi1>, vector<8x4xf32>
    %71 = vector.shape_cast %38 : vector<8x1xf32> to vector<8x1xf32>
    %72 = vector.broadcast %71 : vector<8x1xf32> to vector<8x4xf32>
    %73 = arith.select %58, %72, %70 : vector<8x4xi1>, vector<8x4xf32>
    %c0_40 = arith.constant 0 : index
    %c0_41 = arith.constant 0 : index
    %74 = vector.load %arg14[%c0_40, %c0_41] : memref<8x4xf32, #tpu.memory_space<vmem>>, vector<8x4xf32>
    tpu.vector_store %arg14[%c0_40, %c0_41], %73 {strides = array<i32>} : memref<8x4xf32, #tpu.memory_space<vmem>>, vector<8x4xf32>,
    return
  }
  func.func @transform_0(%arg0: i32) -> (i32, i32) {
    %c0_i32 = arith.constant 0 : i32
    %c0_i32_0 = arith.constant 0 : i32
    %c0_i32_1 = arith.constant 0 : i32
    return %c0_i32, %c0_i32_0 : i32, i32
  }
  func.func @transform_1(%arg0: i32) -> (i32, i32) {
    %c0_i32 = arith.constant 0 : i32
    %c0_i32_0 = arith.constant 0 : i32
    return %arg0, %c0_i32 : i32, i32
  }
  func.func @transform_2(%arg0: i32) -> (i32, i32) {
    %c0_i32 = arith.constant 0 : i32
    %c0_i32_0 = arith.constant 0 : i32
    return %arg0, %c0_i32 : i32, i32
  }
  func.func @transform_3(%arg0: i32) -> (i32, i32) {
    %c0_i32 = arith.constant 0 : i32
    %c0_i32_0 = arith.constant 0 : i32
    return %arg0, %c0_i32 : i32, i32
  }
  func.func @transform_4(%arg0: i32) -> (i32, i32) {
    %c0_i32 = arith.constant 0 : i32
    %c0_i32_0 = arith.constant 0 : i32
    return %arg0, %c0_i32 : i32, i32
  }
  func.func @transform_5(%arg0: i32) -> (i32, i32) {
    %c0_i32 = arith.constant 0 : i32
    %c0_i32_0 = arith.constant 0 : i32
    %c0_i32_1 = arith.constant 0 : i32
    return %c0_i32, %c0_i32_0 : i32, i32
  }
  func.func @transform_6(%arg0: i32) -> (i32, i32) {
    %c0_i32 = arith.constant 0 : i32
    %c0_i32_0 = arith.constant 0 : i32
    %c0_i32_1 = arith.constant 0 : i32
    return %c0_i32, %c0_i32_0 : i32, i32
  }
  func.func @transform_7(%arg0: i32) -> (i32, i32) {
    %c0_i32 = arith.constant 0 : i32
    %c0_i32_0 = arith.constant 0 : i32
    %c0_i32_1 = arith.constant 0 : i32
    return %c0_i32, %c0_i32_0 : i32, i32
  }
  func.func @transform_8(%arg0: i32) -> (i32, i32) {
    %c0_i32 = arith.constant 0 : i32
    %c0_i32_0 = arith.constant 0 : i32
    %c0_i32_1 = arith.constant 0 : i32
    return %c0_i32, %c0_i32_0 : i32, i32
  }
  func.func @transform_9(%arg0: i32) -> (i32, i32) {
    %c0_i32 = arith.constant 0 : i32
    %c0_i32_0 = arith.constant 0 : i32
    %c0_i32_1 = arith.constant 0 : i32
    return %c0_i32, %c0_i32_0 : i32, i32
  }
  func.func @transform_10(%arg0: i32) -> (i32, i32) {
    %c0_i32 = arith.constant 0 : i32
    %c0_i32_0 = arith.constant 0 : i32
    %c0_i32_1 = arith.constant 0 : i32
    return %c0_i32, %c0_i32_0 : i32, i32
  }
  func.func @transform_11(%arg0: i32) -> (i32, i32) {
    %c0_i32 = arith.constant 0 : i32
    %c0_i32_0 = arith.constant 0 : i32
    return %arg0, %c0_i32 : i32, i32
  }
  func.func @transform_12(%arg0: i32) -> (i32, i32) {
    %c0_i32 = arith.constant 0 : i32
    %c0_i32_0 = arith.constant 0 : i32
    return %arg0, %c0_i32 : i32, i32
  }
  func.func @transform_13(%arg0: i32) -> (i32, i32) {
    %c0_i32 = arith.constant 0 : i32
    %c0_i32_0 = arith.constant 0 : i32
    return %arg0, %c0_i32 : i32, i32
  }
}

</mosaic_0001>

<bundles_post_ra>
// kernel: tpu_custom_call.1
= control target key start
LH: loop header
LB: loop body
LE: loop exit
PB: predicated region body
PF: predicated region fallthrough
CT: control target
= control target key end

     0   :  { %20 = vsyncpa [#allocation4], 0  ;;  %s1114_s0 = inlined_call_operand.<no memory space> [shape: f32[1,1], index: 0, kind: input, shape index: {}]   ;;  %s1115_s1 = inlined_call_operand.hbm [shape: f32[8,32], index: 1, kind: input, shape index: {}]   ;;  %s1116_s2 = inlined_call_operand.hbm [shape: f32[8,32], index: 2, kind: input, shape index: {}]   ;;  %s1117_s3 = inlined_call_operand.vmem [shape: f32[8,32], index: 3, kind: input, shape index: {}]   ;;  %s1118_s4 = inlined_call_operand.hbm [shape: f32[8,32], index: 4, kind: input, shape index: {}]   ;;  %s1119_s5 = inlined_call_operand.hbm [shape: f32[32,64], index: 5, kind: input, shape index: {}]   ;;  %s1120_s6 = inlined_call_operand.hbm [shape: f32[32,64], index: 6, kind: input, shape index: {}]   ;;  %s1121_s7 = inlined_call_operand.hbm [shape: f32[32,32], index: 7, kind: input, shape index: {}]   ;;  %s1122_s8 = inlined_call_operand.hbm [shape: f32[32,32], index: 8, kind: input, shape index: {}]   ;;  %s1123_s9 = inlined_call_operand.vmem [shape: f32[1,64], index: 9, kind: input, shape index: {}]   ;;  %s1124_s10 = inlined_call_operand.vmem [shape: f32[1,64], index: 10, kind: input, shape index: {}]   ;;  %s1125_s11 = inlined_call_operand.hbm [shape: f32[8,32], index: 11, kind: output, shape index: {0}]   ;;  %s1126_s12 = inlined_call_operand.hbm [shape: f32[8,32], index: 12, kind: output, shape index: {1}]   ;;  %s1127_s13 = inlined_call_operand.vmem [shape: f32[8,4], index: 13, kind: output, shape index: {2}]  }
   0x1   :  { %21 = vsyncpa [#allocation7], 0 }
   0x2   :  { %22 = vsyncpa [#allocation10], 0 }
   0x3   :  { %23 = vsyncpa [#allocation13], 0 }
   0x4   :  { %24 = vsyncpa [#allocation5], 0 }
   0x5   :  { %25 = vsyncpa [#allocation17], 0  ;;  %s864_s25 = smov [#allocation6]   ;;  %s865_s27 = smov [#allocation9]  }
   0x6   :  { %s44_s26 = sshll.u32 %s864_s25, 4  ;;  %s65_s28 = sshll.u32 %s865_s27, 4  ;;  %s45_s26 = int_to_ptr.vmem [resolvable:$true] %s44_s26  ;;  %s949_s28 = int_to_ptr.vmem [resolvable:$true] %s65_s28 }
   0x7   :  { %s654_s14 = scalar_lea.hbm %s1116_s2, 128 }
   0x8   :  { %p655_p0 = scmp.ne.s32.totalorder %s1116_s2, %s654_s14  ;;  %p658_p1 = scmp.lt.u32.totalorder %s654_s14, %s1116_s2 }
   0xa   :  { %p660_p2 = pnand %p658_p1, %p655_p0 }
   0xc   :  { %663 = shalt.err (!%p660_p2)
}
   0xd   :  { %s664_s19 = scalar_lea.vmem %s45_s26, 128  ;;  %p669_p4 = scmp.lt.s32.totalorder %s45_s26, %s45_s26 }
   0xe   :  { %p665_p3 = scmp.ne.s32.totalorder %s45_s26, %s664_s19  ;;  %p670_p5 = scmp.lt.s32.totalorder %s664_s19, %s664_s19 }
  0x10   :  { %p671_p6 = por %p670_p5, %p669_p4 }
  0x12   :  { %p672_p7 = pnand %p671_p6, %p665_p3 }
  0x14   :  { %675 = shalt.err (!%p672_p7)
}
  0x15   :  { %47 = dma.hbm_to_vmem [thread:$0]  %s1116_s2, 128, %s45_s26, [#allocation7]  }
  0x16   :  { %s676_s24 = scalar_lea.hbm %s1119_s5, 512 }
  0x17   :  { %p677_p8 = scmp.ne.s32.totalorder %s1119_s5, %s676_s24  ;;  %p680_p9 = scmp.lt.u32.totalorder %s676_s24, %s1119_s5 }
  0x19   :  { %p682_p10 = pnand %p680_p9, %p677_p8 }
  0x1b   :  { %685 = shalt.err (!%p682_p10)
}
  0x1c   :  { %s686_s14 = scalar_lea.vmem %s949_s28, 512  ;;  %p691_p12 = scmp.lt.s32.totalorder %s949_s28, %s949_s28 }
  0x1d   :  { %p687_p11 = scmp.ne.s32.totalorder %s949_s28, %s686_s14  ;;  %p692_p13 = scmp.lt.s32.totalorder %s686_s14, %s686_s14 }
  0x1f   :  { %p693_p0 = por %p692_p13, %p691_p12 }
  0x21   :  { %p694_p1 = pnand %p693_p0, %p687_p11 }
  0x23   :  { %697 = shalt.err (!%p694_p1)
}
  0x24   :  { %s866_s2 = smov 128   ;;  %s867_s26 = smov 8  }
  0x25   :  { %71 = dma.hbm_to_vmem [thread:$0]  %s1119_s5, 512, %s949_s28, [#allocation10], %s866_s2, %s866_s2, %s867_s26  }
  0x26   :  { %s868_s17 = smov [#allocation12]   ;;  %s869_s19 = smov [#allocation3]  }
  0x27   :  { %s89_s18 = sshll.u32 %s868_s17, 4  ;;  %s34_s20 = sshll.u32 %s869_s19, 4  ;;  %s90_s18 = int_to_ptr.vmem [resolvable:$true] %s89_s18  ;;  %s35_s20 = int_to_ptr.vmem [resolvable:$true] %s34_s20 }
  0x28   :  { %s698_s23 = scalar_lea.hbm %s1121_s7, 512 }
  0x29   :  { %p699_p2 = scmp.ne.s32.totalorder %s1121_s7, %s698_s23  ;;  %p702_p3 = scmp.lt.u32.totalorder %s698_s23, %s1121_s7 }
  0x2b   :  { %p704_p4 = pnand %p702_p3, %p699_p2 }
  0x2d   :  { %707 = shalt.err (!%p704_p4)
}
  0x2e   :  { %s708_s5 = scalar_lea.vmem %s90_s18, 512  ;;  %p713_p6 = scmp.lt.s32.totalorder %s90_s18, %s90_s18 }
  0x2f   :  { %p709_p5 = scmp.ne.s32.totalorder %s90_s18, %s708_s5  ;;  %p714_p7 = scmp.lt.s32.totalorder %s708_s5, %s708_s5 }
  0x31   :  { %p715_p8 = por %p714_p7, %p713_p6 }
  0x33   :  { %p716_p9 = pnand %p715_p8, %p709_p5 }
  0x35   :  { %719 = shalt.err (!%p716_p9)
}
  0x36   :  { %95 = dma.hbm_to_vmem [thread:$0]  %s1121_s7, 512, %s90_s18, [#allocation13], %s866_s2, %s866_s2, %s867_s26  }
  0x37   :  { %s720_s16 = scalar_lea.hbm %s1115_s1, 128 }
  0x38   :  { %p721_p10 = scmp.ne.s32.totalorder %s1115_s1, %s720_s16  ;;  %p724_p11 = scmp.lt.u32.totalorder %s720_s16, %s1115_s1 }
  0x3a   :  { %p726_p12 = pnand %p724_p11, %p721_p10 }
  0x3c   :  { %729 = shalt.err (!%p726_p12)
}
  0x3d   :  { %s730_s23 = scalar_lea.vmem %s35_s20, 128  ;;  %p735_p0 = scmp.lt.s32.totalorder %s35_s20, %s35_s20 }
  0x3e   :  { %p731_p13 = scmp.ne.s32.totalorder %s35_s20, %s730_s23  ;;  %p736_p1 = scmp.lt.s32.totalorder %s730_s23, %s730_s23 }
  0x40   :  { %p737_p2 = por %p736_p1, %p735_p0 }
  0x42   :  { %p738_p3 = pnand %p737_p2, %p731_p13 }
  0x44   :  { %741 = shalt.err (!%p738_p3)
}
  0x45   :  { %37 = dma.hbm_to_vmem [thread:$0]  %s1115_s1, 128, %s35_s20, [#allocation4]  }
  0x46   :  { %s870_s24 = smov [#allocation8]   ;;  %s871_s27 = smov [#allocation11]  }
  0x47   :  { %s56_s25 = sshll.u32 %s870_s24, 4  ;;  %s77_s29 = sshll.u32 %s871_s27, 4  ;;  %s57_s25 = int_to_ptr.vmem [resolvable:$true] %s56_s25  ;;  %s1010_s29 = int_to_ptr.vmem [resolvable:$true] %s77_s29 }
  0x48   :  { %s742_s30 = scalar_lea.hbm %s1118_s4, 128 }
  0x49   :  { %p743_p4 = scmp.ne.s32.totalorder %s1118_s4, %s742_s30  ;;  %p746_p5 = scmp.lt.u32.totalorder %s742_s30, %s1118_s4 }
  0x4b   :  { %p748_p6 = pnand %p746_p5, %p743_p4 }
  0x4d   :  { %751 = shalt.err (!%p748_p6)
}
  0x4e   :  { %s752_s1 = scalar_lea.vmem %s57_s25, 128  ;;  %p757_p8 = scmp.lt.s32.totalorder %s57_s25, %s57_s25 }
  0x4f   :  { %p753_p7 = scmp.ne.s32.totalorder %s57_s25, %s752_s1  ;;  %p758_p9 = scmp.lt.s32.totalorder %s752_s1, %s752_s1 }
  0x51   :  { %p759_p10 = por %p758_p9, %p757_p8 }
  0x53   :  { %p760_p11 = pnand %p759_p10, %p753_p7 }
  0x55   :  { %763 = shalt.err (!%p760_p11)
}
  0x56   :  { %59 = dma.hbm_to_vmem [thread:$0]  %s1118_s4, 128, %s57_s25, [#allocation7]  }
  0x57   :  { %s764_s23 = scalar_lea.hbm %s1120_s6, 512 }
  0x58   :  { %p765_p12 = scmp.ne.s32.totalorder %s1120_s6, %s764_s23  ;;  %p768_p13 = scmp.lt.u32.totalorder %s764_s23, %s1120_s6 }
  0x5a   :  { %p770_p0 = pnand %p768_p13, %p765_p12 }
  0x5c   :  { %773 = shalt.err (!%p770_p0)
}
  0x5d   :  { %s774_s5 = scalar_lea.vmem %s1010_s29, 512  ;;  %p779_p2 = scmp.lt.s32.totalorder %s1010_s29, %s1010_s29 }
  0x5e   :  { %p775_p1 = scmp.ne.s32.totalorder %s1010_s29, %s774_s5  ;;  %p780_p3 = scmp.lt.s32.totalorder %s774_s5, %s774_s5 }
  0x60   :  { %p781_p4 = por %p780_p3, %p779_p2 }
  0x62   :  { %p782_p5 = pnand %p781_p4, %p775_p1 }
  0x64   :  { %785 = shalt.err (!%p782_p5)
}
  0x65   :  { %83 = dma.hbm_to_vmem [thread:$0]  %s1120_s6, 512, %s1010_s29, [#allocation10], %s866_s2, %s866_s2, %s867_s26  }
  0x66   :  { %s872_s28 = smov [#allocation14]   ;;  %s786_s16 = scalar_lea.hbm %s1122_s8, 512 }
  0x67   :  { %s101_s30 = sshll.u32 %s872_s28, 4  ;;  %p787_p6 = scmp.ne.s32.totalorder %s1122_s8, %s786_s16  ;;  %s102_s30 = int_to_ptr.vmem [resolvable:$true] %s101_s30 }
  0x68   :  { %p790_p7 = scmp.lt.u32.totalorder %s786_s16, %s1122_s8 }
  0x6a   :  { %p792_p8 = pnand %p790_p7, %p787_p6 }
  0x6c   :  { %795 = shalt.err (!%p792_p8)
}
  0x6d   :  { %s796_s21 = scalar_lea.vmem %s102_s30, 512  ;;  %p801_p10 = scmp.lt.s32.totalorder %s102_s30, %s102_s30 }
  0x6e   :  { %p797_p9 = scmp.ne.s32.totalorder %s102_s30, %s796_s21  ;;  %p802_p11 = scmp.lt.s32.totalorder %s796_s21, %s796_s21 }
  0x70   :  { %p803_p12 = por %p802_p11, %p801_p10 }
  0x72   :  { %p804_p13 = pnand %p803_p12, %p797_p9 }
  0x74   :  { %807 = shalt.err (!%p804_p13)
}
  0x75   :  { %107 = dma.hbm_to_vmem [thread:$0]  %s1122_s8, 512, %s102_s30, [#allocation13], %s866_s2, %s866_s2, %s867_s26  }
  0x76   :  { %852 = dma.done.wait [#allocation4], 128  }
  0x77   :  { %853 = vsyncadd [#allocation4], 4294967168 }
  0x78   :  { %854 = dma.done.wait [#allocation7], 256  }
  0x79   :  { %855 = vsyncadd [#allocation7], 4294967040 }
  0x7a   :  { %856 = dma.done.wait [#allocation10], 1024  }
  0x7b   :  { %857 = vsyncadd [#allocation10], 4294966272 }
  0x7c   :  { %858 = dma.done.wait [#allocation13], 1024  }
  0x7d   :  { %859 = vsyncadd [#allocation13], 4294966272  ;;  %v873_v0 = vmov 0.0|0.0   ;;  %vm874_vm0 = vmmov 0   ;;  %v875_v1 = vmov 0.0   ;;  %v145_v2 = vld [vmem:[#allocation11] sm:$0xff]  ;;  %v297_v28 = vlaneseq }
  0x7e   :  { %613 = vmatprep.subr.bf16.mxu0 %v873_v0  ;;  %619 = vmatprep.subr.bf16.mxu1 %v873_v0  ;;  %v146_v3 = vld [vmem:[#allocation11 + $0x8] sm:$0xff]  ;;  %v140_v4 = vld [vmem:[#allocation9] sm:$0xff]  ;;  %v147_v7 = vld [vmem:[#allocation11 + $0x10] sm:$0xff]  ;;  %vm149_vm1 = vcmask 261120   ;;  %v136_v30 = vstv %s1114_s0 }
  0x7f   :  { %577 = vmatprep.mubr.msk.f32.mxu0 %vm874_vm0, %v875_v1  ;;  %588 = vmatprep.mubr.msk.f32.mxu1 %vm874_vm0, %v875_v1  ;;  %v614_v5 = vpack.c.bf16 %v146_v3, %v145_v2  ;;  %v141_v6 = vld [vmem:[#allocation9 + $0x8] sm:$0xff]  ;;  %v148_v8 = vld [vmem:[#allocation11 + $0x18] sm:$0xff]  ;;  %v142_v10 = vld [vmem:[#allocation9 + $0x10] sm:$0xff]  ;;  %v298_v32 = vshrl.u32 %v297_v28, 7 }
  0x80   :  { %v620_v9 = vpack.c.bf16 %v141_v6, %v140_v4  ;;  %v143_v11 = vld [vmem:[#allocation9 + $0x18] sm:$0xff]  ;;  %v617_v12 = vpack.c.bf16 %v148_v8, %v147_v7  ;;  %v144_v14 = vld [vmem:[#allocation6] sm:$0xff]  ;;  %v139_v15 = vld [vmem:[#allocation3] sm:$0xff] }
  0x81   :  { %615 = vmatpush3.bf16.msra.mxu0 %v614_v5  ;;  %v623_v13 = vpack.c.bf16 %v143_v11, %v142_v10  ;;  %v320_v16 = vld [vmem:[#allocation12] sm:$0xff]  ;;  %v321_v17 = vld [vmem:[#allocation12 + $0x8] sm:$0xff]  ;;  %v322_v19 = vld [vmem:[#allocation12 + $0x10] sm:$0xff]  ;;  %v299_v35 = vsub.s32 0, %v298_v32 }
  0x82   :  { %621 = vmatpush3.bf16.msra.mxu1 %v620_v9  ;;  %616 = vmatprep.subr.bf16.mxu0 %v873_v0  ;;  %v626_v18 = vpack.c.bf16 %v321_v17, %v320_v16  ;;  %v323_v20 = vld [vmem:[#allocation12 + $0x18] sm:$0xff]  ;;  %v397_v22 = vld [vmem:[#allocation14] sm:$0xff]  ;;  %v398_v23 = vld [vmem:[#allocation14 + $0x8] sm:$0xff] }
  0x83   :  { %622 = vmatprep.subr.bf16.mxu1 %v873_v0  ;;  %v629_v21 = vpack.c.bf16 %v323_v20, %v322_v19  ;;  %v399_v24 = vld [vmem:[#allocation14 + $0x10] sm:$0xff]  ;;  %v632_v25 = vpack.c.bf16 %v398_v23, %v397_v22  ;;  %v400_v26 = vld [vmem:[#allocation14 + $0x18] sm:$0xff]  ;;  %v135_v29 = vld [vmem:[%s1124_s10] sm:$0x1] }
  0x84   :  { %v635_v27 = vpack.c.bf16 %v400_v26, %v399_v24  ;;  %v137_v31 = vmul.f32 %v136_v30, %v135_v29  ;;  %v134_v33 = vld [vmem:[%s1123_s9] sm:$0x1]  ;;  %s876_s9 = smov 96   ;;  %v314_v49 = vld [vmem:[#allocation8] sm:$0xff] }
  0x85   :  { %618 = vmatpush3.bf16.msra.mxu0 %v617_v12  ;;  %v311_v45 = vld [vmem:[%s1117_s3] sm:$0xff]  ;;  %s877_s3 = smov [#allocation15]  }
  0x86   :  { %624 = vmatpush3.bf16.msra.mxu1 %v623_v13  ;;  %625 = vmatprep.subr.bf16.mxu0 %v873_v0  ;;  %v138_v34 = vadd.f32 %v137_v31, %v134_v33  ;;  %s515_s18 = sshll.u32 %s877_s3, 4  ;;  %s516_s18 = int_to_ptr.vmem [resolvable:$true] %s515_s18 }
  0x87   :  { %631 = vmatprep.subr.bf16.mxu1 %v873_v0  ;;  %s808_s24 = scalar_lea.vmem %s516_s18, 128  ;;  %p813_p1 = scmp.lt.s32.totalorder %s516_s18, %s516_s18 }
  0x88   :  { %578 = vmatmul.mubr.msk.f32.vlgmr.msra.gmra.mrb[0].mxu0 %vm149_vm1, %v144_v14  ;;  %v300_v37 = vrot.slane %v138_v34, %v299_v35  ;;  %p809_p0 = scmp.ne.s32.totalorder %s516_s18, %s808_s24  ;;  %p814_p2 = scmp.lt.s32.totalorder %s808_s24, %s808_s24 }
  0x89   :  { %589 = vmatmul.mubr.msk.f32.vlgmr.msra.gmra.mrb[0].mxu1 %vm149_vm1, %v139_v15  ;;  %599 = vmatprep.mubr.msk.f32.mxu0 %vm874_vm0, %v875_v1 }
  0x8a   :  { %610 = vmatprep.mubr.msk.f32.mxu1 %vm874_vm0, %v875_v1  ;;  %627 = vmatpush3.bf16.msra.mxu0 %v626_v18  ;;  %p815_p3 = por %p814_p2, %p813_p1 }
  0x8b   :  { %628 = vmatprep.subr.bf16.mxu0 %v873_v0  ;;  %633 = vmatpush3.bf16.msra.mxu1 %v632_v25 }
  0x8c   :  { %634 = vmatprep.subr.bf16.mxu1 %v873_v0  ;;  %p816_p4 = pnand %p815_p3, %p809_p0 }
  0x8e   :  { %630 = vmatpush3.bf16.msra.mxu0 %v629_v21 }
  0x8f   :  { %636 = vmatpush3.bf16.msra.mxu1 %v635_v27 }
 0x15b   :  { %v219_v36 = vpop.f32.mrb[0].mxu0 }
 0x15c   :  { %v292_v38 = vpop.f32.mrb[0].mxu1  ;;  %v579_v39 = vpop.f32.mrb[1].mxu0 }
 0x15d   :  { %v293_v40 = vadd.f32 %v292_v38, %v219_v36  ;;  %v590_v41 = vpop.f32.mrb[1].mxu1 }
 0x15f   :  { %v302_v42 = vadd.f32 %v300_v37, %v293_v40 }
 0x161   :  { %652 = vtanh.f32 %v302_v42 }
 0x16b   :  { %v653_v43 = vpop.eup %652 }
 0x16c   :  { %304 = vst.msk [vmem:[#allocation15] sm:$0xff] %vm149_vm1, %v653_v43  ;;  %v310_v44 = vmul.f32 %v653_v43, %v653_v43 }
 0x16e   :  { %v485_v46 = vsel %vm149_vm1, %v310_v44, 0.0  ;;  %v312_v47 = vsub.f32 1.0, %v310_v44 }
 0x16f   :  { %486 = vadd.xlane.f32.xlu1 %v485_v46 }
 0x170   :  { %316 = vrot.lane.b32.xlu0 %v312_v47, %s876_s9  ;;  %v313_v48 = vmul.f32 %v312_v47, %v311_v45 }
 0x172   :  { %600 = vmatmul.mubr.msk.f32.vlgmr.msra.gmra.mrb[2].mxu0 %vm149_vm1, %v313_v48 }
 0x174   :  { %491 = vrot.lane.b32.xlu0 %v310_v44, %s876_s9 }
 0x1e2   :  { %v317_v50 = vpop.permute.xlu0 %316 }
 0x1e3   :  { %v319_v51 = vmul.f32 %v317_v50, %v314_v49 }
 0x1e5   :  { %611 = vmatmul.mubr.msk.f32.vlgmr.msra.gmra.mrb[2].mxu1 %vm149_vm1, %v319_v51 }
 0x1e6   :  { %v492_v52 = vpop.permute.xlu0 %491 }
 0x1e7   :  { %v494_v53 = vsel %vm149_vm1, %v492_v52, 0.0 }
 0x1e8   :  { %495 = vadd.xlane.f32.xlu1 %v494_v53 }
 0x1fc   :  { %v487_v62 = vpop.xlane.xlu1 %486 }
 0x245   :  { %v393_v54 = vpop.f32.mrb[2].mxu0 }
 0x246   :  { %v474_v55 = vmul.f32 %v393_v54, %v393_v54  ;;  %v601_v56 = vpop.f32.mrb[3].mxu0 }
 0x248   :  { %v475_v57 = vsel %vm149_vm1, %v474_v55, 0.0 }
 0x249   :  { %476 = vadd.xlane.f32.xlu1 %v475_v57 }
 0x25a   :  { %306 = vrot.lane.b32.xlu1 %v653_v43, %s876_s9 }
 0x2b8   :  { %v470_v58 = vpop.f32.mrb[2].mxu1 }
 0x2b9   :  { %v480_v59 = vmul.f32 %v470_v58, %v470_v58  ;;  %v612_v60 = vpop.f32.mrb[3].mxu1 }
 0x2bb   :  { %v481_v61 = vsel %vm149_vm1, %v480_v59, 0.0 }
 0x2bc   :  { %482 = vadd.xlane.f32.xlu0 %v481_v61 }
 0x2bd   :  { %819 = shalt.err (!%p816_p4)
}
 0x2be   :  { %s820_s4 = scalar_lea.hbm %s1125_s11, 128 }
 0x2bf   :  { %p821_p5 = scmp.ne.s32.totalorder %s1125_s11, %s820_s4  ;;  %p824_p6 = scmp.lt.u32.totalorder %s820_s4, %s1125_s11 }
 0x2c1   :  { %p826_p7 = pnand %p824_p6, %p821_p5 }
 0x2c3   :  { %829 = shalt.err (!%p826_p7)
}
 0x2c4   :  { %518 = dma.vmem_to_hbm [thread:$0]  %s516_s18, 128, %s1125_s11, [#allocation5]   ;;  %v496_v63 = vpop.xlane.xlu1 %495 }
 0x2c5   :  { %s878_s17 = smov [#allocation16]  }
 0x2c6   :  { %s525_s1 = sshll.u32 %s878_s17, 4  ;;  %s526_s1 = int_to_ptr.vmem [resolvable:$true] %s525_s1 }
 0x2c7   :  { %s830_s20 = scalar_lea.vmem %s526_s1, 128  ;;  %p835_p9 = scmp.lt.s32.totalorder %s526_s1, %s526_s1 }
 0x2c8   :  { %p831_p8 = scmp.ne.s32.totalorder %s526_s1, %s830_s20  ;;  %p836_p10 = scmp.lt.s32.totalorder %s830_s20, %s830_s20 }
 0x2ca   :  { %p837_p11 = por %p836_p10, %p835_p9 }
 0x2cc   :  { %p838_p12 = pnand %p837_p11, %p831_p8 }
 0x2d6   :  { %v477_v0 = vpop.xlane.xlu1 %476 }
 0x2da   :  { %v307_v1 = vpop.permute.xlu1 %306 }
 0x2db   :  { %309 = vst.msk [vmem:[#allocation16] sm:$0xff] %vm149_vm1, %v307_v1 }
 0x2dc   :  { %841 = shalt.err (!%p838_p12)
}
 0x2dd   :  { %s842_s6 = scalar_lea.hbm %s1126_s12, 128 }
 0x2de   :  { %p843_p13 = scmp.ne.s32.totalorder %s1126_s12, %s842_s6  ;;  %p846_p0 = scmp.lt.u32.totalorder %s842_s6, %s1126_s12 }
 0x2e0   :  { %p848_p1 = pnand %p846_p0, %p843_p13 }
 0x2e2   :  { %851 = shalt.err (!%p848_p1)
}
 0x2e3   :  { %528 = dma.vmem_to_hbm [thread:$0]  %s526_s1, 128, %s1126_s12, [#allocation17]   ;;  %v500_v2 = vand.u32 127, %v297_v28  ;;  %v497_v3 = vmul.f32 0.03125, %v496_v63  ;;  %v488_v4 = vmul.f32 0.03125, %v487_v62  ;;  %v479_v9 = vmul.f32 0.03125, %v477_v0 }
 0x2e4   :  { %vm507_vm5 = vcmask 31744  }
 0x2e5   :  { %vm503_vm2 = vcmp.eq.s32.totalorder %v500_v2, 2  ;;  %v498_v6 = vmul.f32 0.5, %v497_v3  ;;  %vm502_vm3 = vcmp.eq.s32.totalorder %v500_v2, 1  ;;  %v489_v8 = vmul.f32 0.5, %v488_v4 }
 0x2e6   :  { %vm501_vm4 = vcmp.eq.s32.totalorder %v500_v2, 0 }
 0x349   :  { %v483_v5 = vpop.xlane.xlu0 %482 }
 0x34a   :  { %v484_v7 = vmul.f32 0.03125, %v483_v5 }
 0x34c   :  { %v504_v10 = vsel %vm503_vm2, %v484_v7, %v498_v6 }
 0x34d   :  { %v505_v11 = vsel %vm502_vm3, %v489_v8, %v504_v10 }
 0x34e   :  { %v506_v12 = vsel %vm501_vm4, %v479_v9, %v505_v11 }
 0x34f   :  { %508 = vst.msk [vmem:[%s1127_s13] sm:$0xff] %vm507_vm5, %v506_v12 }
 0x350   :  { %860 = dma.done.wait [#allocation5], 128  }
 0x351   :  { %861 = vsyncadd [#allocation5], 4294967168 }
 0x352   :  { %862 = dma.done.wait [#allocation17], 128  }
 0x353   :  { %863 = vsyncadd [#allocation17], 4294967168 }
 0x354   :  { %539 = vsyncpa [#allocation4], 1 }
 0x355   :  { %540 = vsyncpa [#allocation7], 1 }
 0x356   :  { %541 = vsyncpa [#allocation10], 1 }
 0x357   :  { %542 = vsyncpa [#allocation13], 1 }
 0x358   :  { %543 = vsyncpa [#allocation5], 1 }
 0x359   :  { %544 = vsyncpa [#allocation17], 1 }

</bundles_post_ra>
